<compile_context>
chip_gen: v5e
topology: v5e:2x2
jax: 0.10.0
libtpu: 0.0.40
codegen_flags: <defaults>
</compile_context>

<pallas_src>
import jax
import jax.numpy as jnp
from jax.experimental import pallas as pl
from jax.experimental.pallas import tpu as pltpu


def _round_up(v: int, m: int) -> int:
    return ((v + m - 1) // m) * m


def _make_kernel(num_actions: int, use_hard_switch: bool):
    A = num_actions
    W = 3 * A + 2

    def kernel(x_ref, w1_ref, b1_ref, wh_ref, bh_ref, out_ref):
        wdt = w1_ref.dtype
        # x: [TB, F]; cast to weight dtype so bf16 slabs drive the MXU in bf16
        # (f32 accumulation either way); no-op for f32 params.
        x = x_ref[...].astype(wdt)

        # shared_fc: Linear + ReLU                                 [TB, Hp] f32
        feats = jnp.dot(x, w1_ref[...], preferred_element_type=jnp.float32)
        feats = jnp.maximum(feats + b1_ref[...], 0.0)

        # Fused heads: one MXU pass -> [l0 | l1 | q1(A) | q2(A)]   [TB, 2+2A]
        heads = jnp.dot(feats.astype(wdt), wh_ref[...],
                        preferred_element_type=jnp.float32) + bh_ref[...]

        l0 = heads[:, 0:1]
        l1 = heads[:, 1:2]
        q1 = heads[:, 2:2 + A]
        q2 = heads[:, 2 + A:2 + 2 * A]

        # 2-way softmax == sigmoid(l0 - l1), saturation-safe (single exp).
        d = l0 - l1                                   # [TB, 1]
        e = jnp.exp(-jnp.abs(d))
        inv = 1.0 / (1.0 + e)
        p0 = jnp.where(d >= 0, inv, e * inv)
        p1 = 1.0 - p0

        if use_hard_switch:
            # argmax over 2 lanes (ties -> index 0)  ==  (l0 >= l1)
            final_q = jnp.where(d >= 0, q1, q2)
        else:
            final_q = p0 * q1 + p1 * q2

        # Single unmasked full-width store of the lane-dense output slab.
        tb = out_ref.shape[0]
        pad = out_ref.shape[1] - W
        parts = [final_q, p0, p1, q1, q2]
        if pad > 0:
            parts.append(jnp.zeros((tb, pad), jnp.float32))
        out_ref[...] = jnp.concatenate(parts, axis=1).astype(out_ref.dtype)

    return kernel


def pack_params(params, dtype=jnp.float32):
    """Prepare the 8 nn.Linear tensors as 4 kernel inputs.

    w1: [F, Hp]   b1: [1, Hp]   wh: [Hp, 2+2A] = [ws|wq1|wq2]   bh: [1, 2+2A]
    Hidden dim is zero-padded to a sublane multiple so the weight layouts are
    aligned; padded hidden units contribute exactly zero.  Keep dtype=f32 on
    v5e (no bf16 VPU/EUP); bf16 only helps large-batch runs on v6e/v7x.
    """
    w1, b1 = params["w1"], params["b1"]
    ws, wq1, wq2 = params["ws"], params["wq1"], params["wq2"]
    bs, bq1, bq2 = params["bs"], params["bq1"], params["bq2"]
    H = w1.shape[1]
    sub = 16 if dtype == jnp.bfloat16 else 8
    Hp = _round_up(H, sub)
    if Hp != H:
        w1 = jnp.pad(w1, ((0, 0), (0, Hp - H)))
        b1 = jnp.pad(b1, ((0, 0), (0, Hp - H)))
        ws = jnp.pad(ws, ((0, Hp - H), (0, 0)))
        wq1 = jnp.pad(wq1, ((0, Hp - H), (0, 0)))
        wq2 = jnp.pad(wq2, ((0, Hp - H), (0, 0)))
    wh = jnp.concatenate([ws, wq1, wq2], axis=1)
    bh = jnp.concatenate([bs, bq1, bq2], axis=1)
    return {"w1": w1.astype(dtype), "b1": b1.astype(jnp.float32),
            "wh": wh.astype(dtype), "bh": bh.astype(jnp.float32)}


def hierarchical_dqn_forward(x, packed, use_hard_switch=False, block_b=1024,
                             out_dtype=jnp.float32, return_packed=False):
    """Pallas forward.  x: [B, in_features] f32; packed: output of pack_params.

    out_dtype=jnp.bfloat16 halves output write-back bytes (large-batch,
    write-bound regime) at reduced precision.  return_packed=True returns the
    raw padded [B, W_pad] slab so the consumer can fuse its own slicing.
    """
    w1, b1, wh, bh = packed["w1"], packed["b1"], packed["wh"], packed["bh"]
    B, F = x.shape
    Hp = w1.shape[1]
    A = (wh.shape[1] - 2) // 2
    W = 3 * A + 2
    W_pad = _round_up(W, 128)                 # lane-dense output width

    # Batch tile: multiple of 8, large enough to amortize ~0.35 us/step, and
    # >= 2 grid steps whenever possible so v7x's second TC gets work.
    if B > block_b:
        tb = block_b
    elif B >= 16:
        tb = _round_up(pl.cdiv(B, 2), 8)
    else:
        tb = _round_up(B, 8)
    B_pad = _round_up(B, tb)
    x_in = x if B_pad == B else jnp.pad(x, ((0, B_pad - B), (0, 0)))
    grid = (B_pad // tb,)

    out_itemsize = jnp.dtype(out_dtype).itemsize
    flops = 2 * B_pad * (F * Hp + Hp * (2 + 2 * A))
    bytes_accessed = (B_pad * F * x.dtype.itemsize
                      + w1.size * w1.dtype.itemsize + b1.size * 4
                      + wh.size * wh.dtype.itemsize + bh.size * 4
                      + B_pad * W_pad * out_itemsize)

    out = pl.pallas_call(
        _make_kernel(A, use_hard_switch),
        out_shape=jax.ShapeDtypeStruct((B_pad, W_pad), out_dtype),
        grid=grid,
        in_specs=[
            pl.BlockSpec((tb, F), lambda i: (i, 0)),        # x: pipelined batch tile
            pl.BlockSpec(w1.shape, lambda i: (0, 0)),       # weights stay VMEM-resident
            pl.BlockSpec(b1.shape, lambda i: (0, 0)),
            pl.BlockSpec(wh.shape, lambda i: (0, 0)),
            pl.BlockSpec(bh.shape, lambda i: (0, 0)),
        ],
        out_specs=pl.BlockSpec((tb, W_pad), lambda i: (i, 0)),
        compiler_params=pltpu.CompilerParams(
            dimension_semantics=("parallel",)),
        cost_estimate=pl.CostEstimate(flops=int(flops),
                                      transcendentals=int(B_pad),
                                      bytes_accessed=int(bytes_accessed)),
    )(x_in, w1, b1, wh, bh)

    out = out[:B] if B_pad != B else out
    if return_packed:
        return out
    core = out[:, :W]                          # single pass over the padded slab
    final_q = core[:, 0:A]
    probs = core[:, A:A + 2]
    q1 = core[:, A + 2:2 * A + 2]
    q2 = core[:, 2 * A + 2:W]
    return final_q, probs, q1, q2


def init_params(key, in_features, num_actions, hidden_dim=128):
    """Deterministic init mirroring nn.Linear's uniform(-1/sqrt(fan_in), +...)."""
    ks = jax.random.split(key, 8)

    def lin(kw, kb, fan_in, fan_out):
        bound = 1.0 / jnp.sqrt(jnp.float32(fan_in))
        w = jax.random.uniform(kw, (fan_in, fan_out), jnp.float32, -bound, bound)
        b = jax.random.uniform(kb, (1, fan_out), jnp.float32, -bound, bound)
        return w, b

    w1, b1 = lin(ks[0], ks[1], in_features, hidden_dim)
    ws, bs = lin(ks[2], ks[3], hidden_dim, 2)
    wq1, bq1 = lin(ks[4], ks[5], hidden_dim, num_actions)
    wq2, bq2 = lin(ks[6], ks[7], hidden_dim, num_actions)
    return dict(w1=w1, b1=b1, ws=ws, bs=bs,
                wq1=wq1, bq1=bq1, wq2=wq2, bq2=bq2)


def reference_forward(x, p, use_hard_switch=False):
    """Pure-JAX reference replicating the PyTorch semantics."""
    feats = jnp.maximum(x @ p["w1"] + p["b1"], 0.0)
    logits = feats @ p["ws"] + p["bs"]
    probs = jax.nn.softmax(logits, axis=-1)
    q1 = feats @ p["wq1"] + p["bq1"]
    q2 = feats @ p["wq2"] + p["bq2"]
    if use_hard_switch:
        choice = jnp.argmax(probs, axis=-1, keepdims=True)
        final_q = jnp.where(choice == 0, q1, q2)
    else:
        final_q = probs[:, 0:1] * q1 + probs[:, 1:2] * q2
    return final_q, probs, q1, q2


if __name__ == "__main__":
    B, in_features, num_actions, hidden_dim = 8, 16, 8, 32

    key = jax.random.PRNGKey(0)
    k_x, k_p = jax.random.split(key)
    x = jax.random.normal(k_x, (B, in_features), jnp.float32)
    params = init_params(k_p, in_features, num_actions, hidden_dim)
    packed = pack_params(params)   # pack_params(params, jnp.bfloat16) for v6e/v7x throughput

    fwd = jax.jit(hierarchical_dqn_forward,
                  static_argnames=("use_hard_switch", "block_b", "out_dtype",
                                   "return_packed"))

    # soft-switch path (default forward)
    outs = jax.block_until_ready(fwd(x, packed, use_hard_switch=False))
    refs = reference_forward(x, params, use_hard_switch=False)
    for o, r in zip(outs, refs):
        assert o.shape == r.shape, (o.shape, r.shape)
        assert jnp.max(jnp.abs(o - r)) < 1e-4

    # hard-switch path
    outs_h = jax.block_until_ready(fwd(x, packed, use_hard_switch=True))
    refs_h = reference_forward(x, params, use_hard_switch=True)
    for o, r in zip(outs_h, refs_h):
        assert o.shape == r.shape, (o.shape, r.shape)
        assert jnp.max(jnp.abs(o - r)) < 1e-4

    print("KERNEL_OK")
</pallas_src>

<mosaic_0001>
module attributes {stable_mosaic.version = 11 : i64} {
  func.func @kernel(%arg0: i32, %arg1: memref<8x16xf32, #tpu.memory_space<vmem>>, %arg2: memref<16x32xf32, #tpu.memory_space<vmem>>, %arg3: memref<1x32xf32, #tpu.memory_space<vmem>>, %arg4: memref<32x18xf32, #tpu.memory_space<vmem>>, %arg5: memref<1x18xf32, #tpu.memory_space<vmem>>, %arg6: memref<8x128xf32, #tpu.memory_space<vmem>>) attributes {dimension_semantics = [#tpu.dimension_semantics<parallel>], iteration_bounds = array<i64: 1>, scalar_prefetch = 0 : i64, scratch_operands = 0 : i64, tpu.core_type = #tpu.core_type<tc>, window_params = [{transform_indices = @transform_0, window_bounds = array<i64: 8, 16>}, {pipeline_mode = #tpu.pipeline_mode<synchronous>, transform_indices = @transform_1, window_bounds = array<i64: 16, 32>}, {pipeline_mode = #tpu.pipeline_mode<synchronous>, transform_indices = @transform_2, window_bounds = array<i64: 1, 32>}, {pipeline_mode = #tpu.pipeline_mode<synchronous>, transform_indices = @transform_3, window_bounds = array<i64: 32, 18>}, {pipeline_mode = #tpu.pipeline_mode<synchronous>, transform_indices = @transform_4, window_bounds = array<i64: 1, 18>}, {transform_indices = @transform_5, window_bounds = array<i64: 8, 128>}]} {
    %c0 = arith.constant 0 : index
    %c0_0 = arith.constant 0 : index
    %0 = vector.load %arg1[%c0, %c0_0] : memref<8x16xf32, #tpu.memory_space<vmem>>, vector<8x16xf32>
    %c0_1 = arith.constant 0 : index
    %c0_2 = arith.constant 0 : index
    %1 = vector.load %arg2[%c0_1, %c0_2] : memref<16x32xf32, #tpu.memory_space<vmem>>, vector<16x32xf32>
    %cst = arith.constant dense<0.000000e+00> : vector<8x32xf32>
    %2 = tpu.matmul %0, %1, %cst {dimension_numbers = #tpu.dot_dimension_numbers<[1], [0], [0], [1], [0, 0, 1, 1], [], []>} : vector<8x16xf32>, vector<16x32xf32>, vector<8x32xf32> -> vector<8x32xf32>
    %c0_3 = arith.constant 0 : index
    %c0_4 = arith.constant 0 : index
    %3 = vector.load %arg3[%c0_3, %c0_4] : memref<1x32xf32, #tpu.memory_space<vmem>>, vector<1x32xf32>
    %4 = vector.broadcast %3 : vector<1x32xf32> to vector<8x32xf32>
    %5 = arith.addf %2, %4 : vector<8x32xf32>
    %cst_5 = arith.constant 0.000000e+00 : f32
    %6 = vector.broadcast %cst_5 : f32 to vector<8x32xf32>
    %7 = arith.maximumf %5, %6 : vector<8x32xf32>
    %c0_6 = arith.constant 0 : index
    %c0_7 = arith.constant 0 : index
    %8 = vector.load %arg4[%c0_6, %c0_7] : memref<32x18xf32, #tpu.memory_space<vmem>>, vector<32x18xf32>
    %cst_8 = arith.constant dense<0.000000e+00> : vector<8x18xf32>
    %9 = tpu.matmul %7, %8, %cst_8 {dimension_numbers = #tpu.dot_dimension_numbers<[1], [0], [0], [1], [0, 0, 1, 1], [], []>} : vector<8x32xf32>, vector<32x18xf32>, vector<8x18xf32> -> vector<8x18xf32>
    %c0_9 = arith.constant 0 : index
    %c0_10 = arith.constant 0 : index
    %10 = vector.load %arg5[%c0_9, %c0_10] : memref<1x18xf32, #tpu.memory_space<vmem>>, vector<1x18xf32>
    %11 = vector.broadcast %10 : vector<1x18xf32> to vector<8x18xf32>
    %12 = arith.addf %9, %11 : vector<8x18xf32>
    %13 = vector.extract_strided_slice %12 {offsets = [0, 0], sizes = [8, 1], strides = [1, 1]} : vector<8x18xf32> to vector<8x1xf32>
    %14 = vector.extract_strided_slice %12 {offsets = [0, 1], sizes = [8, 1], strides = [1, 1]} : vector<8x18xf32> to vector<8x1xf32>
    %15 = vector.extract_strided_slice %12 {offsets = [0, 2], sizes = [8, 8], strides = [1, 1]} : vector<8x18xf32> to vector<8x8xf32>
    %16 = vector.extract_strided_slice %12 {offsets = [0, 10], sizes = [8, 8], strides = [1, 1]} : vector<8x18xf32> to vector<8x8xf32>
    %17 = arith.subf %13, %14 : vector<8x1xf32>
    %18 = math.absf %17 : vector<8x1xf32>
    %cst_11 = arith.constant 0.000000e+00 : f32
    %19 = vector.broadcast %cst_11 : f32 to vector<8x1xf32>
    %20 = arith.subf %19, %18 : vector<8x1xf32>
    %21 = math.exp %20 : vector<8x1xf32>
    %cst_12 = arith.constant 1.000000e+00 : f32
    %22 = vector.broadcast %cst_12 : f32 to vector<8x1xf32>
    %23 = arith.addf %22, %21 : vector<8x1xf32>
    %cst_13 = arith.constant 1.000000e+00 : f32
    %24 = vector.broadcast %cst_13 : f32 to vector<8x1xf32>
    %25 = arith.divf %24, %23 : vector<8x1xf32>
    %cst_14 = arith.constant 0.000000e+00 : f32
    %26 = vector.broadcast %cst_14 : f32 to vector<8x1xf32>
    %27 = arith.cmpf oge, %17, %26 : vector<8x1xf32>
    %28 = arith.mulf %21, %25 : vector<8x1xf32>
    %29 = arith.select %27, %25, %28 : vector<8x1xi1>, vector<8x1xf32>
    %cst_15 = arith.constant 1.000000e+00 : f32
    %30 = vector.broadcast %cst_15 : f32 to vector<8x1xf32>
    %31 = arith.subf %30, %29 : vector<8x1xf32>
    %32 = vector.broadcast %29 : vector<8x1xf32> to vector<8x8xf32>
    %33 = arith.mulf %32, %15 : vector<8x8xf32>
    %34 = vector.broadcast %31 : vector<8x1xf32> to vector<8x8xf32>
    %35 = arith.mulf %34, %16 : vector<8x8xf32>
    %36 = arith.addf %33, %35 : vector<8x8xf32>
    %cst_16 = arith.constant 0.000000e+00 : f32
    %37 = vector.broadcast %cst_16 : f32 to vector<8x102xf32>
    %38 = tpu.concatenate %36, %29, %31, %15, %16, %37 in 1 : vector<8x8xf32>, vector<8x1xf32>, vector<8x1xf32>, vector<8x8xf32>, vector<8x8xf32>, vector<8x102xf32> -> vector<8x128xf32>
    %c0_17 = arith.constant 0 : index
    %c0_18 = arith.constant 0 : index
    %39 = vector.load %arg6[%c0_17, %c0_18] : memref<8x128xf32, #tpu.memory_space<vmem>>, vector<8x128xf32>
    tpu.vector_store %arg6[%c0_17, %c0_18], %38 {strides = array<i32>} : memref<8x128xf32, #tpu.memory_space<vmem>>, vector<8x128xf32>,
    return
  }
  func.func @transform_0(%arg0: i32) -> (i32, i32) {
    %c0_i32 = arith.constant 0 : i32
    %c0_i32_0 = arith.constant 0 : i32
    return %arg0, %c0_i32 : i32, i32
  }
  func.func @transform_1(%arg0: i32) -> (i32, i32) {
    %c0_i32 = arith.constant 0 : i32
    %c0_i32_0 = arith.constant 0 : i32
    %c0_i32_1 = arith.constant 0 : i32
    return %c0_i32, %c0_i32_0 : i32, i32
  }
  func.func @transform_2(%arg0: i32) -> (i32, i32) {
    %c0_i32 = arith.constant 0 : i32
    %c0_i32_0 = arith.constant 0 : i32
    %c0_i32_1 = arith.constant 0 : i32
    return %c0_i32, %c0_i32_0 : i32, i32
  }
  func.func @transform_3(%arg0: i32) -> (i32, i32) {
    %c0_i32 = arith.constant 0 : i32
    %c0_i32_0 = arith.constant 0 : i32
    %c0_i32_1 = arith.constant 0 : i32
    return %c0_i32, %c0_i32_0 : i32, i32
  }
  func.func @transform_4(%arg0: i32) -> (i32, i32) {
    %c0_i32 = arith.constant 0 : i32
    %c0_i32_0 = arith.constant 0 : i32
    %c0_i32_1 = arith.constant 0 : i32
    return %c0_i32, %c0_i32_0 : i32, i32
  }
  func.func @transform_5(%arg0: i32) -> (i32, i32) {
    %c0_i32 = arith.constant 0 : i32
    %c0_i32_0 = arith.constant 0 : i32
    return %arg0, %c0_i32 : i32, i32
  }
}

</mosaic_0001>

<bundles_post_ra>
// kernel: hierarchical_dqn_forward.1
= control target key start
LH: loop header
LB: loop body
LE: loop exit
PB: predicated region body
PF: predicated region fallthrough
CT: control target
= control target key end

     0   :  { %vm27_vm0 = vcmask 130048   ;;  %vm60_vm1 = vcmask 261120   ;;  %s174_s9 = smov 127   ;;  %v175_v14 = vmov 0   ;;  %s179_s10 = smov 126   ;;  %vm143_vm7 = vcmask 64512   ;;  %s240_s1 = inlined_call_operand.vmem [shape: f32[16,32], index: 1, kind: input, shape index: {}]   ;;  %s241_s0 = inlined_call_operand.vmem [shape: f32[8,16], index: 0, kind: input, shape index: {}]   ;;  %s242_s3 = inlined_call_operand.vmem [shape: f32[32,18], index: 3, kind: input, shape index: {}]   ;;  %s243_s2 = inlined_call_operand.vmem [shape: f32[1,32], index: 2, kind: input, shape index: {}]   ;;  %s244_s4 = inlined_call_operand.vmem [shape: f32[1,18], index: 4, kind: input, shape index: {}]   ;;  %s245_s5 = inlined_call_operand.vmem [shape: f32[8,128], index: 5, kind: output, shape index: {}]  }
   0x1   :  { %v22_v0 = vld [vmem:[%s240_s1 + $0x8] sm:$0xff]  ;;  %v21_v1 = vld [vmem:[%s240_s1] sm:$0xff]  ;;  %v55_v3 = vld [vmem:[%s242_s3 + $0x18] sm:$0xff]  ;;  %167 = vset.pattern.permute.xlu1 %v175_v14  ;;  %166 = vset.pattern.permute.xlu0 %v175_v14  ;;  %vm145_vm8 = vcmask 72704   ;;  %vm147_vm9 = vcmask 80896   ;;  %vm149_vm10 = vcmask 146432  }
   0x2   :  { %45 = vmatpush.msra.mxu0 %v22_v0  ;;  %v20_v2 = vld [vmem:[%s241_s0] sm:$0xff]  ;;  %76 = vmatpush.msra.mxu1 %v55_v3  ;;  %v54_v4 = vld [vmem:[%s242_s3 + $0x10] sm:$0xff]  ;;  %v53_v5 = vld [vmem:[%s242_s3 + $0x8] sm:$0xff]  ;;  %vm151_vm11 = vcmask 211968  }
   0x3   :  { %v52_v6 = vld [vmem:[%s242_s3] sm:$0xff]  ;;  %s177_s3 = smov 120  }
   0x4   :  { %46 = vmatpush.msra.mxu0 %v21_v1  ;;  %77 = vmatpush.msra.mxu1 %v54_v4  ;;  %v168_v7 = vld [vmem:[%s243_s2] ss:$0 sm:$0xff]  ;;  %s176_s2 = smov 8  }
   0x5   :  { %158 = vmatmul.msk.f32.vlgmr.msra.gmra.mxu0 %vm27_vm0, %v20_v2  ;;  %v169_v11 = vld [vmem:[%s244_s4] ss:$0 sm:$0xff]  ;;  %s178_s4 = smov 9  }
   0x6   :  { %78 = vmatpush.msra.mxu1 %v53_v5 }
   0x8   :  { %79 = vmatpush.msra.mxu1 %v52_v6 }
  0x82   :  { %v48_v8 = vpop.f32.mrf.mxu0 }
  0x83   :  { %v49_v9 = vadd.f32 %v168_v7, %v48_v8 }
  0x85   :  { %v51_v10 = vmax.f32 %v49_v9, 0.0 }
  0x87   :  { %159 = vmatmul.msk.f32.vlgmr.msra.gmra.mxu1 %vm60_vm1, %v51_v10 }
 0x104   :  { %v81_v12 = vpop.f32.mrf.mxu1 }
 0x105   :  { %v82_v13 = vadd.f32 %v169_v11, %v81_v12 }
 0x107   :  { %85 = vrot.lane.b32.xlu0 %v82_v13, %s174_s9 }
 0x179   :  { %v86_v15 = vpop.permute.xlu0 %85 }
 0x17a   :  { %v88_v16 = vsub.f32 %v82_v13, %v86_v15 }
 0x17c   :  { %v89_v17 = vand.u32 2147483647, %v88_v16  ;;  %vm109_vm6 = vcmp.ge.f32.partialorder %v88_v16, 0.0 }
 0x17e   :  { %v90_v18 = vsub.f32 0.0, %v89_v17 }
 0x180   :  { %v91_v19 = vmul.f32 1.442695, %v90_v18 }
 0x182   :  { %170 = vpow2.f32 %v91_v19 }
 0x188   :  { %v171_v20 = vpop.eup %170 }
 0x189   :  { %v93_v21 = vadd.f32 1.0, %v171_v20 }
 0x18b   :  { %172 = vrcp.f32 %v93_v21  ;;  %v105_v25 = vand.u32 2147483648, %v93_v21  ;;  %v103_v27 = vand.u32 2147483647, %v93_v21  ;;  %vm99_vm3 = vweird.f32 %v93_v21 }
 0x18d   :  { %v106_v29 = vor.u32 1.1754944e-38, %v105_v25  ;;  %vm104_vm5 = vcmp.eq.f32.partialorder %v103_v27, 8.507059e+37 }
 0x191   :  { %v173_v22 = vpop.eup %172 }
 0x192   :  { %v95_v23 = vmul.f32 %v173_v22, %v93_v21  ;;  %vm100_vm2 = vweird.f32 %v173_v22 }
 0x193   :  { %vm101_vm4 = vmor %vm99_vm3, %vm100_vm2 }
 0x194   :  { %v96_v24 = vsub.f32 1.0, %v95_v23 }
 0x196   :  { %v97_v26 = vmul.f32 %v173_v22, %v96_v24 }
 0x198   :  { %v98_v28 = vadd.f32 %v173_v22, %v97_v26 }
 0x19a   :  { %v102_v30 = vsel %vm101_vm4, %v173_v22, %v98_v28 }
 0x19b   :  { %v107_v31 = vsel %vm104_vm5, %v106_v29, %v102_v30 }
 0x19c   :  { %v110_v32 = vmul.f32 %v171_v20, %v107_v31 }
 0x19e   :  { %v111_v33 = vsel %vm109_vm6, %v107_v31, %v110_v32 }
 0x19f   :  { %134 = vrot.lane.b32.xlu2 %v111_v33, %s176_s2  ;;  %115 = vperm.xlu1 %167, %v111_v33   ;;  %v112_v34 = vsub.f32 1.0, %v111_v33 }
 0x1a1   :  { %121 = vperm.xlu0 %166, %v112_v34  }
 0x1f9   :  { %v135_v41 = vpop.permute.xlu2 %134 }
 0x211   :  { %v116_v37 = vpop.permute.xlu1 %115 }
 0x212   :  { %v118_v38 = vmul.f32 %v116_v37, %v82_v13 }
 0x213   :  { %v122_v35 = vpop.permute.xlu0 %121 }
 0x214   :  { %v124_v36 = vmul.f32 %v122_v35, %v82_v13 }
 0x216   :  { %126 = vrot.lane.b32.xlu1 %v124_v36, %s177_s3 }
 0x21e   :  { %137 = vrot.lane.b32.xlu1 %v112_v34, %s178_s4 }
 0x288   :  { %v127_v39 = vpop.permute.xlu1 %126 }
 0x289   :  { %v129_v40 = vadd.f32 %v127_v39, %v118_v38 }
 0x28b   :  { %131 = vrot.lane.b32.xlu2 %v129_v40, %s179_s10 }
 0x290   :  { %v138_v44 = vpop.permute.xlu1 %137 }
 0x293   :  { %140 = vrot.lane.b32.xlu2 %v82_v13, %s176_s2 }
 0x2e5   :  { %v132_v42 = vpop.permute.xlu2 %131 }
 0x2e6   :  { %v144_v43 = vsel %vm143_vm7, %v132_v42, %v135_v41 }
 0x2e7   :  { %v146_v46 = vsel %vm145_vm8, %v144_v43, %v138_v44 }
 0x2ed   :  { %v141_v45 = vpop.permute.xlu2 %140 }
 0x2ee   :  { %v148_v47 = vsel %vm147_vm9, %v146_v46, %v141_v45 }
 0x2ef   :  { %v150_v48 = vsel %vm149_vm10, %v148_v47, %v141_v45 }
 0x2f0   :  { %v152_v49 = vsel %vm151_vm11, %v150_v48, 0.0 }
 0x2f1   :  { %153 = vst [vmem:[%s245_s5] sm:$0xff] %v152_v49 }

</bundles_post_ra>
